<compile_context>
chip_gen: v6e
topology: v6e:2x2x1
jax: 0.10.0
libtpu: 0.0.40
codegen_flags: <defaults>
</compile_context>

<pallas_src>
import functools
import math

import jax
import jax.numpy as jnp
from jax.experimental import pallas as pl
from jax.experimental.pallas import tpu as pltpu


_VMEM_LIMIT = 64 * 1024 * 1024


def _row_tile(n, target=256):
    # Whole array if it fits in one tile (block == full dim is always legal),
    # otherwise a 256-row tile (multiple of 8, matches v6e/v7x MXU width).
    return n if n <= target else target


# ----------------------------------------------------------------------------
# Kernels
# ----------------------------------------------------------------------------
def _qkv_proj_kernel(xq_ref, xk_ref, xv_ref,
                     wqt_ref, wkt_ref, wvt_ref,
                     bq_ref, bk_ref, bv_ref,
                     q_ref, k_ref, v_ref, *, compute_dtype):
    """Fused Q/K/V projections for one row tile (weights stay resident)."""
    cd = compute_dtype
    q_ref[...] = (jnp.dot(xq_ref[...].astype(cd), wqt_ref[...],
                          preferred_element_type=jnp.float32)
                  + bq_ref[...]).astype(q_ref.dtype)
    k_ref[...] = (jnp.dot(xk_ref[...].astype(cd), wkt_ref[...],
                          preferred_element_type=jnp.float32)
                  + bk_ref[...]).astype(k_ref.dtype)
    v_ref[...] = (jnp.dot(xv_ref[...].astype(cd), wvt_ref[...],
                          preferred_element_type=jnp.float32)
                  + bv_ref[...]).astype(v_ref.dtype)


def _linear_kernel(x_ref, wt_ref, b_ref, o_ref, *, compute_dtype):
    o_ref[...] = (jnp.dot(x_ref[...].astype(compute_dtype), wt_ref[...],
                          preferred_element_type=jnp.float32)
                  + b_ref[...]).astype(o_ref.dtype)


def _attend(q, k, v, mask, o_ref, w_ref, compute_dtype):
    """q: (H,TQ,dp) already scaled, k/v: (H,S,dp), mask: (TQ,S) or None."""
    cd = compute_dtype
    # contraction over the last dim of both operands -> no explicit k.T
    s = jnp.einsum("hqd,hkd->hqk", q.astype(cd), k.astype(cd),
                   preferred_element_type=jnp.float32)          # (H,TQ,S)
    if mask is not None:
        s = jnp.where(mask[None, :, :] == 0.0, jnp.float32(-1e9), s)
    # numerically stable softmax (stats in f32)
    s = s - jnp.max(s, axis=-1, keepdims=True)
    e = jnp.exp(s)
    w = e * pl.reciprocal(jnp.sum(e, axis=-1, keepdims=True), approx=True)
    w_ref[0] = w
    o_ref[0] = jnp.einsum("hqk,hkd->hqd", w.astype(cd), v.astype(cd),
                          preferred_element_type=jnp.float32).astype(o_ref.dtype)


def _mha_kernel(q_ref, k_ref, v_ref, o_ref, w_ref, *, compute_dtype):
    _attend(q_ref[0], k_ref[0], v_ref[0], None, o_ref, w_ref, compute_dtype)


def _mha_kernel_masked(q_ref, k_ref, v_ref, m_ref, o_ref, w_ref, *, compute_dtype):
    _attend(q_ref[0], k_ref[0], v_ref[0], m_ref[0], o_ref, w_ref, compute_dtype)


# ----------------------------------------------------------------------------
# Wrappers
# ----------------------------------------------------------------------------
def qkv_projection(xq, xk, xv, wq, bq, wk, bk, wv, bv, *,
                   compute_dtype=jnp.float32):
    """xq/xk/xv: (N, D) rows.  w*: (D_out, D_in) torch layout.  Returns q,k,v (N,D_out)."""
    n, d_in = xq.shape
    d_out = wq.shape[0]
    tm = _row_tile(n)
    row_spec = pl.BlockSpec((tm, d_in), lambda i: (i, 0))
    w_spec = pl.BlockSpec((d_in, d_out), lambda i: (0, 0))   # pinned, no re-DMA
    b_spec = pl.BlockSpec((1, d_out), lambda i: (0, 0))
    out_spec = pl.BlockSpec((tm, d_out), lambda i: (i, 0))
    cd = compute_dtype
    return pl.pallas_call(
        functools.partial(_qkv_proj_kernel, compute_dtype=cd),
        out_shape=(jax.ShapeDtypeStruct((n, d_out), jnp.float32),) * 3,
        grid=(pl.cdiv(n, tm),),
        in_specs=[row_spec, row_spec, row_spec,
                  w_spec, w_spec, w_spec,
                  b_spec, b_spec, b_spec],
        out_specs=(out_spec, out_spec, out_spec),
        compiler_params=pltpu.CompilerParams(
            dimension_semantics=("parallel",),
            vmem_limit_bytes=_VMEM_LIMIT),
    )(xq, xk, xv,
      jnp.transpose(wq).astype(cd), jnp.transpose(wk).astype(cd),
      jnp.transpose(wv).astype(cd),
      bq.reshape(1, d_out), bk.reshape(1, d_out), bv.reshape(1, d_out))


def linear(x2d, w, b, *, compute_dtype=jnp.float32):
    """x2d: (N, D_in), w: (D_out, D_in) torch layout, b: (D_out,)."""
    n, d_in = x2d.shape
    d_out = w.shape[0]
    tm = _row_tile(n)
    return pl.pallas_call(
        functools.partial(_linear_kernel, compute_dtype=compute_dtype),
        out_shape=jax.ShapeDtypeStruct((n, d_out), jnp.float32),
        grid=(pl.cdiv(n, tm),),
        in_specs=[pl.BlockSpec((tm, d_in), lambda i: (i, 0)),
                  pl.BlockSpec((d_in, d_out), lambda i: (0, 0)),
                  pl.BlockSpec((1, d_out), lambda i: (0, 0))],
        out_specs=pl.BlockSpec((tm, d_out), lambda i: (i, 0)),
        compiler_params=pltpu.CompilerParams(
            dimension_semantics=("parallel",),
            vmem_limit_bytes=_VMEM_LIMIT),
    )(x2d, jnp.transpose(w).astype(compute_dtype), b.reshape(1, d_out))


def multi_head_attention(q, k, v, src_mask, *, compute_dtype=jnp.float32,
                         q_tile=256):
    """q/k/v: (B, H, S, depth) f32 (q pre-scaled).  src_mask: None or (B, S, S)."""
    B, H, S, dp = q.shape
    tq = S if S <= q_tile else q_tile
    grid = (B, pl.cdiv(S, tq))

    q_spec = pl.BlockSpec((1, H, tq, dp), lambda b, qi: (b, 0, qi, 0))
    kv_spec = pl.BlockSpec((1, H, S, dp), lambda b, qi: (b, 0, 0, 0))
    o_spec = pl.BlockSpec((1, H, tq, dp), lambda b, qi: (b, 0, qi, 0))
    w_spec = pl.BlockSpec((1, H, tq, S), lambda b, qi: (b, 0, qi, 0))
    out_shape = (jax.ShapeDtypeStruct((B, H, S, dp), jnp.float32),
                 jax.ShapeDtypeStruct((B, H, S, S), jnp.float32))
    cparams = pltpu.CompilerParams(
        dimension_semantics=("parallel", "parallel"),
        vmem_limit_bytes=_VMEM_LIMIT)

    if src_mask is None:
        # mask-free kernel: no (B,H,S,S) padding streamed from HBM, no select.
        return pl.pallas_call(
            functools.partial(_mha_kernel, compute_dtype=compute_dtype),
            out_shape=out_shape, grid=grid,
            in_specs=[q_spec, kv_spec, kv_spec],
            out_specs=(o_spec, w_spec),
            compiler_params=cparams,
        )(q, k, v)

    mask = src_mask.astype(jnp.float32)            # (B,S,S) — never H-replicated
    m_spec = pl.BlockSpec((1, tq, S), lambda b, qi: (b, qi, 0))
    return pl.pallas_call(
        functools.partial(_mha_kernel_masked, compute_dtype=compute_dtype),
        out_shape=out_shape, grid=grid,
        in_specs=[q_spec, kv_spec, kv_spec, m_spec],
        out_specs=(o_spec, w_spec),
        compiler_params=cparams,
    )(q, k, v, mask)


def self_attention(query, key, value, params, num_heads, src_mask=None, *,
                   compute_dtype=jnp.float32):
    """Mirrors SelfAttention.forward.

    query/key/value: (B, S, d_model) float32
    src_mask: optional (B, S, S)
    returns (output (B, S, d_model), attention_weights (B, H, S, S))
    """
    B, S, D = query.shape
    H = num_heads
    dp = D // H
    wq, bq, wk, bk, wv, bv, wo, bo = params

    # Fold the 1/sqrt(depth) softmax scale into the Q projection (free on host).
    scale = 1.0 / math.sqrt(dp)
    wq_s = wq * scale
    bq_s = bq * scale

    # Fused Q/K/V projections (single pipelined pallas_call).
    q2, k2, v2 = qkv_projection(
        query.reshape(B * S, D), key.reshape(B * S, D), value.reshape(B * S, D),
        wq_s, bq_s, wk, bk, wv, bv, compute_dtype=compute_dtype)

    # (B, S, H, dp) -> (B, H, S, dp)
    q4 = jnp.transpose(q2.reshape(B, S, H, dp), (0, 2, 1, 3))
    k4 = jnp.transpose(k2.reshape(B, S, H, dp), (0, 2, 1, 3))
    v4 = jnp.transpose(v2.reshape(B, S, H, dp), (0, 2, 1, 3))

    attn_out, attn_w = multi_head_attention(q4, k4, v4, src_mask,
                                            compute_dtype=compute_dtype)

    # concat heads and final output projection
    concat = jnp.transpose(attn_out, (0, 2, 1, 3)).reshape(B * S, D)
    out = linear(concat, wo, bo, compute_dtype=compute_dtype).reshape(B, S, D)
    return out, attn_w


# ----------------------------------------------------------------------------
# Pure-JAX reference (for correctness check)
# ----------------------------------------------------------------------------
def self_attention_ref(query, key, value, params, num_heads, src_mask=None):
    B, S, D = query.shape
    H = num_heads
    dp = D // H
    wq, bq, wk, bk, wv, bv, wo, bo = params

    def lin(x, w, b):
        return x @ w.T + b

    q = lin(query, wq, bq).reshape(B, S, H, dp).transpose(0, 2, 1, 3)
    k = lin(key, wk, bk).reshape(B, S, H, dp).transpose(0, 2, 1, 3)
    v = lin(value, wv, bv).reshape(B, S, H, dp).transpose(0, 2, 1, 3)

    scores = jnp.einsum("bhqd,bhkd->bhqk", q, k) / math.sqrt(dp)
    if src_mask is not None:
        m = src_mask[:, None, :, :].astype(jnp.float32)
        scores = jnp.where(m == 0.0, jnp.float32(-1e9), scores)
    w = jax.nn.softmax(scores, axis=-1)
    o = jnp.einsum("bhqk,bhkd->bhqd", w, v)
    o = o.transpose(0, 2, 1, 3).reshape(B, S, D)
    return lin(o, wo, bo), w


# ----------------------------------------------------------------------------
if __name__ == "__main__":
    def run_case(B, S, D, H, with_mask, seed):
        keys = jax.random.split(jax.random.PRNGKey(seed), 12)

        def init_linear(kw, kb, d_out, d_in):
            bound = 1.0 / math.sqrt(d_in)
            w = jax.random.uniform(kw, (d_out, d_in), jnp.float32, -bound, bound)
            b = jax.random.uniform(kb, (d_out,), jnp.float32, -bound, bound)
            return w, b

        wq, bq = init_linear(keys[0], keys[1], D, D)
        wk, bk = init_linear(keys[2], keys[3], D, D)
        wv, bv = init_linear(keys[4], keys[5], D, D)
        wo, bo = init_linear(keys[6], keys[7], D, D)
        params = (wq, bq, wk, bk, wv, bv, wo, bo)

        query = jax.random.normal(keys[8], (B, S, D), jnp.float32)
        key_t = jax.random.normal(keys[9], (B, S, D), jnp.float32)
        value = jax.random.normal(keys[10], (B, S, D), jnp.float32)

        if with_mask:
            src_mask = (jax.random.uniform(keys[11], (B, S, S)) > 0.3
                        ).astype(jnp.float32)
            src_mask = src_mask.at[:, :, 0].set(1.0)  # avoid fully-masked rows
        else:
            src_mask = None

        out, attn_w = self_attention(query, key_t, value, params, H, src_mask)
        out = jax.block_until_ready(out)
        attn_w = jax.block_until_ready(attn_w)

        out_ref, w_ref = self_attention_ref(query, key_t, value, params, H,
                                            src_mask)
        assert out.shape == (B, S, D) and attn_w.shape == (B, H, S, S)
        assert jnp.allclose(out, out_ref, atol=2e-3, rtol=2e-3), (
            f"output mismatch: {jnp.max(jnp.abs(out - out_ref))}")
        assert jnp.allclose(attn_w, w_ref, atol=2e-3, rtol=2e-3), (
            f"weights mismatch: {jnp.max(jnp.abs(attn_w - w_ref))}")

    # small shapes (module-consistent), mask-free and masked paths
    run_case(B=2, S=8, D=32, H=4, with_mask=False, seed=0)
    run_case(B=2, S=8, D=32, H=4, with_mask=True, seed=1)
    # medium shape: exercises multi-step row tiling in the projection kernels
    run_case(B=4, S=128, D=128, H=8, with_mask=False, seed=2)

    print("KERNEL_OK")
</pallas_src>

<mosaic_0001>
module attributes {stable_mosaic.version = 11 : i64} {
  func.func @_qkv_proj_kernel(%arg0: i32, %arg1: memref<16x32xf32, #tpu.memory_space<vmem>>, %arg2: memref<16x32xf32, #tpu.memory_space<vmem>>, %arg3: memref<16x32xf32, #tpu.memory_space<vmem>>, %arg4: memref<32x32xf32, #tpu.memory_space<vmem>>, %arg5: memref<32x32xf32, #tpu.memory_space<vmem>>, %arg6: memref<32x32xf32, #tpu.memory_space<vmem>>, %arg7: memref<1x32xf32, #tpu.memory_space<vmem>>, %arg8: memref<1x32xf32, #tpu.memory_space<vmem>>, %arg9: memref<1x32xf32, #tpu.memory_space<vmem>>, %arg10: memref<16x32xf32, #tpu.memory_space<vmem>>, %arg11: memref<16x32xf32, #tpu.memory_space<vmem>>, %arg12: memref<16x32xf32, #tpu.memory_space<vmem>>) attributes {dimension_semantics = [#tpu.dimension_semantics<parallel>], iteration_bounds = array<i64: 1>, scalar_prefetch = 0 : i64, scratch_operands = 0 : i64, tpu.core_type = #tpu.core_type<tc>, window_params = [{transform_indices = @transform_0, window_bounds = array<i64: 16, 32>}, {transform_indices = @transform_1, window_bounds = array<i64: 16, 32>}, {transform_indices = @transform_2, window_bounds = array<i64: 16, 32>}, {pipeline_mode = #tpu.pipeline_mode<synchronous>, transform_indices = @transform_3, window_bounds = array<i64: 32, 32>}, {pipeline_mode = #tpu.pipeline_mode<synchronous>, transform_indices = @transform_4, window_bounds = array<i64: 32, 32>}, {pipeline_mode = #tpu.pipeline_mode<synchronous>, transform_indices = @transform_5, window_bounds = array<i64: 32, 32>}, {pipeline_mode = #tpu.pipeline_mode<synchronous>, transform_indices = @transform_6, window_bounds = array<i64: 1, 32>}, {pipeline_mode = #tpu.pipeline_mode<synchronous>, transform_indices = @transform_7, window_bounds = array<i64: 1, 32>}, {pipeline_mode = #tpu.pipeline_mode<synchronous>, transform_indices = @transform_8, window_bounds = array<i64: 1, 32>}, {transform_indices = @transform_9, window_bounds = array<i64: 16, 32>}, {transform_indices = @transform_10, window_bounds = array<i64: 16, 32>}, {transform_indices = @transform_11, window_bounds = array<i64: 16, 32>}]} {
    %c0 = arith.constant 0 : index
    %c0_0 = arith.constant 0 : index
    %0 = vector.load %arg1[%c0, %c0_0] : memref<16x32xf32, #tpu.memory_space<vmem>>, vector<16x32xf32>
    %c0_1 = arith.constant 0 : index
    %c0_2 = arith.constant 0 : index
    %1 = vector.load %arg4[%c0_1, %c0_2] : memref<32x32xf32, #tpu.memory_space<vmem>>, vector<32x32xf32>
    %cst = arith.constant dense<0.000000e+00> : vector<16x32xf32>
    %2 = tpu.matmul %0, %1, %cst {dimension_numbers = #tpu.dot_dimension_numbers<[1], [0], [0], [1], [0, 0, 1, 1], [], []>} : vector<16x32xf32>, vector<32x32xf32>, vector<16x32xf32> -> vector<16x32xf32>
    %c0_3 = arith.constant 0 : index
    %c0_4 = arith.constant 0 : index
    %3 = vector.load %arg7[%c0_3, %c0_4] : memref<1x32xf32, #tpu.memory_space<vmem>>, vector<1x32xf32>
    %4 = vector.broadcast %3 : vector<1x32xf32> to vector<16x32xf32>
    %5 = arith.addf %2, %4 : vector<16x32xf32>
    %c0_5 = arith.constant 0 : index
    %c0_6 = arith.constant 0 : index
    %6 = vector.load %arg10[%c0_5, %c0_6] : memref<16x32xf32, #tpu.memory_space<vmem>>, vector<16x32xf32>
    tpu.vector_store %arg10[%c0_5, %c0_6], %5 {strides = array<i32>} : memref<16x32xf32, #tpu.memory_space<vmem>>, vector<16x32xf32>,
    %c0_7 = arith.constant 0 : index
    %c0_8 = arith.constant 0 : index
    %7 = vector.load %arg2[%c0_7, %c0_8] : memref<16x32xf32, #tpu.memory_space<vmem>>, vector<16x32xf32>
    %c0_9 = arith.constant 0 : index
    %c0_10 = arith.constant 0 : index
    %8 = vector.load %arg5[%c0_9, %c0_10] : memref<32x32xf32, #tpu.memory_space<vmem>>, vector<32x32xf32>
    %cst_11 = arith.constant dense<0.000000e+00> : vector<16x32xf32>
    %9 = tpu.matmul %7, %8, %cst_11 {dimension_numbers = #tpu.dot_dimension_numbers<[1], [0], [0], [1], [0, 0, 1, 1], [], []>} : vector<16x32xf32>, vector<32x32xf32>, vector<16x32xf32> -> vector<16x32xf32>
    %c0_12 = arith.constant 0 : index
    %c0_13 = arith.constant 0 : index
    %10 = vector.load %arg8[%c0_12, %c0_13] : memref<1x32xf32, #tpu.memory_space<vmem>>, vector<1x32xf32>
    %11 = vector.broadcast %10 : vector<1x32xf32> to vector<16x32xf32>
    %12 = arith.addf %9, %11 : vector<16x32xf32>
    %c0_14 = arith.constant 0 : index
    %c0_15 = arith.constant 0 : index
    %13 = vector.load %arg11[%c0_14, %c0_15] : memref<16x32xf32, #tpu.memory_space<vmem>>, vector<16x32xf32>
    tpu.vector_store %arg11[%c0_14, %c0_15], %12 {strides = array<i32>} : memref<16x32xf32, #tpu.memory_space<vmem>>, vector<16x32xf32>,
    %c0_16 = arith.constant 0 : index
    %c0_17 = arith.constant 0 : index
    %14 = vector.load %arg3[%c0_16, %c0_17] : memref<16x32xf32, #tpu.memory_space<vmem>>, vector<16x32xf32>
    %c0_18 = arith.constant 0 : index
    %c0_19 = arith.constant 0 : index
    %15 = vector.load %arg6[%c0_18, %c0_19] : memref<32x32xf32, #tpu.memory_space<vmem>>, vector<32x32xf32>
    %cst_20 = arith.constant dense<0.000000e+00> : vector<16x32xf32>
    %16 = tpu.matmul %14, %15, %cst_20 {dimension_numbers = #tpu.dot_dimension_numbers<[1], [0], [0], [1], [0, 0, 1, 1], [], []>} : vector<16x32xf32>, vector<32x32xf32>, vector<16x32xf32> -> vector<16x32xf32>
    %c0_21 = arith.constant 0 : index
    %c0_22 = arith.constant 0 : index
    %17 = vector.load %arg9[%c0_21, %c0_22] : memref<1x32xf32, #tpu.memory_space<vmem>>, vector<1x32xf32>
    %18 = vector.broadcast %17 : vector<1x32xf32> to vector<16x32xf32>
    %19 = arith.addf %16, %18 : vector<16x32xf32>
    %c0_23 = arith.constant 0 : index
    %c0_24 = arith.constant 0 : index
    %20 = vector.load %arg12[%c0_23, %c0_24] : memref<16x32xf32, #tpu.memory_space<vmem>>, vector<16x32xf32>
    tpu.vector_store %arg12[%c0_23, %c0_24], %19 {strides = array<i32>} : memref<16x32xf32, #tpu.memory_space<vmem>>, vector<16x32xf32>,
    return
  }
  func.func @transform_0(%arg0: i32) -> (i32, i32) {
    %c0_i32 = arith.constant 0 : i32
    %c0_i32_0 = arith.constant 0 : i32
    return %arg0, %c0_i32 : i32, i32
  }
  func.func @transform_1(%arg0: i32) -> (i32, i32) {
    %c0_i32 = arith.constant 0 : i32
    %c0_i32_0 = arith.constant 0 : i32
    return %arg0, %c0_i32 : i32, i32
  }
  func.func @transform_2(%arg0: i32) -> (i32, i32) {
    %c0_i32 = arith.constant 0 : i32
    %c0_i32_0 = arith.constant 0 : i32
    return %arg0, %c0_i32 : i32, i32
  }
  func.func @transform_3(%arg0: i32) -> (i32, i32) {
    %c0_i32 = arith.constant 0 : i32
    %c0_i32_0 = arith.constant 0 : i32
    %c0_i32_1 = arith.constant 0 : i32
    return %c0_i32, %c0_i32_0 : i32, i32
  }
  func.func @transform_4(%arg0: i32) -> (i32, i32) {
    %c0_i32 = arith.constant 0 : i32
    %c0_i32_0 = arith.constant 0 : i32
    %c0_i32_1 = arith.constant 0 : i32
    return %c0_i32, %c0_i32_0 : i32, i32
  }
  func.func @transform_5(%arg0: i32) -> (i32, i32) {
    %c0_i32 = arith.constant 0 : i32
    %c0_i32_0 = arith.constant 0 : i32
    %c0_i32_1 = arith.constant 0 : i32
    return %c0_i32, %c0_i32_0 : i32, i32
  }
  func.func @transform_6(%arg0: i32) -> (i32, i32) {
    %c0_i32 = arith.constant 0 : i32
    %c0_i32_0 = arith.constant 0 : i32
    %c0_i32_1 = arith.constant 0 : i32
    return %c0_i32, %c0_i32_0 : i32, i32
  }
  func.func @transform_7(%arg0: i32) -> (i32, i32) {
    %c0_i32 = arith.constant 0 : i32
    %c0_i32_0 = arith.constant 0 : i32
    %c0_i32_1 = arith.constant 0 : i32
    return %c0_i32, %c0_i32_0 : i32, i32
  }
  func.func @transform_8(%arg0: i32) -> (i32, i32) {
    %c0_i32 = arith.constant 0 : i32
    %c0_i32_0 = arith.constant 0 : i32
    %c0_i32_1 = arith.constant 0 : i32
    return %c0_i32, %c0_i32_0 : i32, i32
  }
  func.func @transform_9(%arg0: i32) -> (i32, i32) {
    %c0_i32 = arith.constant 0 : i32
    %c0_i32_0 = arith.constant 0 : i32
    return %arg0, %c0_i32 : i32, i32
  }
  func.func @transform_10(%arg0: i32) -> (i32, i32) {
    %c0_i32 = arith.constant 0 : i32
    %c0_i32_0 = arith.constant 0 : i32
    return %arg0, %c0_i32 : i32, i32
  }
  func.func @transform_11(%arg0: i32) -> (i32, i32) {
    %c0_i32 = arith.constant 0 : i32
    %c0_i32_0 = arith.constant 0 : i32
    return %arg0, %c0_i32 : i32, i32
  }
}

</mosaic_0001>

<bundles_post_ra>
// kernel: tpu_custom_call.1
= control target key start
LH: loop header
LB: loop body
LE: loop exit
PB: predicated region body
PF: predicated region fallthrough
CT: control target
= control target key end

     0   :  { %17 = vsyncpa [#allocation3], 0  ;;  %s868_s0 = inlined_call_operand.hbm [shape: f32[16,32], index: 0, kind: input, shape index: {}]   ;;  %s869_s1 = inlined_call_operand.hbm [shape: f32[16,32], index: 1, kind: input, shape index: {}]   ;;  %s870_s2 = inlined_call_operand.hbm [shape: f32[16,32], index: 2, kind: input, shape index: {}]   ;;  %s871_s3 = inlined_call_operand.hbm [shape: f32[32,32], index: 3, kind: input, shape index: {}]   ;;  %s872_s4 = inlined_call_operand.hbm [shape: f32[32,32], index: 4, kind: input, shape index: {}]   ;;  %s873_s5 = inlined_call_operand.hbm [shape: f32[32,32], index: 5, kind: input, shape index: {}]   ;;  %s874_s6 = inlined_call_operand.vmem [shape: f32[1,32], index: 6, kind: input, shape index: {}]   ;;  %s875_s7 = inlined_call_operand.vmem [shape: f32[1,32], index: 7, kind: input, shape index: {}]   ;;  %s876_s8 = inlined_call_operand.vmem [shape: f32[1,32], index: 8, kind: input, shape index: {}]   ;;  %s877_s9 = inlined_call_operand.hbm [shape: f32[16,32], index: 9, kind: output, shape index: {0}]   ;;  %s878_s10 = inlined_call_operand.hbm [shape: f32[16,32], index: 10, kind: output, shape index: {1}]   ;;  %s879_s11 = inlined_call_operand.hbm [shape: f32[16,32], index: 11, kind: output, shape index: {2}]  }
   0x1   :  { %18 = vsyncpa [#allocation6], 0 }
   0x2   :  { %19 = vsyncpa [#allocation9], 0 }
   0x3   :  { %20 = vsyncpa [#allocation12], 0 }
   0x4   :  { %21 = vsyncpa [#allocation4], 0 }
   0x5   :  { %22 = vsyncpa [#allocation15], 0  ;;  %s722_s17 = smov [#allocation5]   ;;  %s723_s19 = smov [#allocation8]  }
   0x6   :  { %s40_s18 = sshll.u32 %s722_s17, 4  ;;  %s64_s20 = sshll.u32 %s723_s19, 4  ;;  %s41_s18 = int_to_ptr.vmem [resolvable:$true] %s40_s18  ;;  %s65_s20 = int_to_ptr.vmem [resolvable:$true] %s64_s20 }
   0x7   :  { %s538_s21 = scalar_lea.vmem %s41_s18, 256  ;;  %p543_p1 = scmp.lt.s32.totalorder %s41_s18, %s41_s18 }
   0x8   :  { %p539_p0 = scmp.ne.s32.totalorder %s41_s18, %s538_s21  ;;  %p544_p2 = scmp.lt.s32.totalorder %s538_s21, %s538_s21 }
   0xa   :  { %p545_p3 = por %p544_p2, %p543_p1 }
   0xc   :  { %p546_p4 = pnand %p545_p3, %p539_p0 }
   0xe   :  { %549 = shalt.err (!%p546_p4)
}
   0xf   :  { %s724_s22 = smov 128   ;;  %s725_s23 = smov 8  }
  0x10   :  { %46 = dma.hbm_to_vmem [thread:$0]  %s869_s1, 256, %s41_s18, [#allocation6], %s724_s22, %s724_s22, %s725_s23  }
  0x11   :  { %s558_s26 = scalar_lea.vmem %s65_s20, 512  ;;  %p563_p6 = scmp.lt.s32.totalorder %s65_s20, %s65_s20 }
  0x12   :  { %p559_p5 = scmp.ne.s32.totalorder %s65_s20, %s558_s26  ;;  %p564_p7 = scmp.lt.s32.totalorder %s558_s26, %s558_s26 }
  0x14   :  { %p565_p8 = por %p564_p7, %p563_p6 }
  0x16   :  { %p566_p9 = pnand %p565_p8, %p559_p5 }
  0x18   :  { %569 = shalt.err (!%p566_p9)
}
  0x19   :  { %70 = dma.hbm_to_vmem [thread:$0]  %s871_s3, 512, %s65_s20, [#allocation9], %s724_s22, %s724_s22, %s725_s23  }
  0x1a   :  { %s726_s29 = smov [#allocation2]   ;;  %s727_s12 = smov [#allocation7]  }
  0x1b   :  { %s28_s30 = sshll.u32 %s726_s29, 4  ;;  %s52_s13 = sshll.u32 %s727_s12, 4  ;;  %s29_s30 = int_to_ptr.vmem [resolvable:$true] %s28_s30  ;;  %s53_s13 = int_to_ptr.vmem [resolvable:$true] %s52_s13 }
  0x1c   :  { %s578_s1 = scalar_lea.vmem %s29_s30, 256  ;;  %p583_p11 = scmp.lt.s32.totalorder %s29_s30, %s29_s30 }
  0x1d   :  { %p579_p10 = scmp.ne.s32.totalorder %s29_s30, %s578_s1  ;;  %p584_p12 = scmp.lt.s32.totalorder %s578_s1, %s578_s1 }
  0x1f   :  { %p585_p13 = por %p584_p12, %p583_p11 }
  0x21   :  { %p586_p0 = pnand %p585_p13, %p579_p10 }
  0x23   :  { %589 = shalt.err (!%p586_p0)
}
  0x24   :  { %34 = dma.hbm_to_vmem [thread:$0]  %s868_s0, 256, %s29_s30, [#allocation3], %s724_s22, %s724_s22, %s725_s23  }
  0x25   :  { %s598_s3 = scalar_lea.vmem %s53_s13, 256  ;;  %p603_p2 = scmp.lt.s32.totalorder %s53_s13, %s53_s13 }
  0x26   :  { %p599_p1 = scmp.ne.s32.totalorder %s53_s13, %s598_s3  ;;  %p604_p3 = scmp.lt.s32.totalorder %s598_s3, %s598_s3 }
  0x28   :  { %p605_p4 = por %p604_p3, %p603_p2 }
  0x2a   :  { %p606_p5 = pnand %p605_p4, %p599_p1 }
  0x2c   :  { %609 = shalt.err (!%p606_p5)
}
  0x2d   :  { %58 = dma.hbm_to_vmem [thread:$0]  %s870_s2, 256, %s53_s13, [#allocation6], %s724_s22, %s724_s22, %s725_s23  }
  0x2e   :  { %s728_s18 = smov [#allocation10]   ;;  %s729_s20 = smov [#allocation11]  }
  0x2f   :  { %s76_s19 = sshll.u32 %s728_s18, 4  ;;  %s88_s21 = sshll.u32 %s729_s20, 4  ;;  %s77_s19 = int_to_ptr.vmem [resolvable:$true] %s76_s19  ;;  %s89_s21 = int_to_ptr.vmem [resolvable:$true] %s88_s21 }
  0x30   :  { %s618_s0 = scalar_lea.vmem %s77_s19, 512  ;;  %p623_p7 = scmp.lt.s32.totalorder %s77_s19, %s77_s19 }
  0x31   :  { %p619_p6 = scmp.ne.s32.totalorder %s77_s19, %s618_s0  ;;  %p624_p8 = scmp.lt.s32.totalorder %s618_s0, %s618_s0 }
  0x33   :  { %p625_p9 = por %p624_p8, %p623_p7 }
  0x35   :  { %p626_p10 = pnand %p625_p9, %p619_p6 }
  0x37   :  { %629 = shalt.err (!%p626_p10)
}
  0x38   :  { %82 = dma.hbm_to_vmem [thread:$0]  %s872_s4, 512, %s77_s19, [#allocation9], %s724_s22, %s724_s22, %s725_s23  }
  0x39   :  { %s638_s2 = scalar_lea.vmem %s89_s21, 512  ;;  %p643_p12 = scmp.lt.s32.totalorder %s89_s21, %s89_s21 }
  0x3a   :  { %p639_p11 = scmp.ne.s32.totalorder %s89_s21, %s638_s2  ;;  %p644_p13 = scmp.lt.s32.totalorder %s638_s2, %s638_s2 }
  0x3c   :  { %p645_p0 = por %p644_p13, %p643_p12 }
  0x3e   :  { %p646_p1 = pnand %p645_p0, %p639_p11 }
  0x40   :  { %649 = shalt.err (!%p646_p1)
}
  0x41   :  { %94 = dma.hbm_to_vmem [thread:$0]  %s873_s5, 512, %s89_s21, [#allocation12], %s724_s22, %s724_s22, %s725_s23  }
  0x42   :  { %710 = dma.done.wait [#allocation3], 256  }
  0x43   :  { %711 = vsyncadd [#allocation3], 4294967040 }
  0x44   :  { %712 = dma.done.wait [#allocation6], 512  }
  0x45   :  { %713 = vsyncadd [#allocation6], 4294966784 }
  0x46   :  { %714 = dma.done.wait [#allocation9], 1024  }
  0x47   :  { %715 = vsyncadd [#allocation9], 4294966272 }
  0x48   :  { %716 = dma.done.wait [#allocation12], 512  }
  0x49   :  { %717 = vsyncadd [#allocation12], 4294966784  ;;  %v124_v0 = vld [vmem:[#allocation8 + $0x18] sm:$0xff]  ;;  %v123_v1 = vld [vmem:[#allocation8 + $0x10] sm:$0xff]  ;;  %vm132_vm0 = vcmask 261120   ;;  %s730_s28 = smov [#allocation13]  }
  0x4a   :  { %486 = vmatprep.subr.mxu0 %v124_v0  ;;  %v221_v2 = vld [vmem:[#allocation10 + $0x18] sm:$0xff]  ;;  %v119_v3 = vld [vmem:[#allocation2] sm:$0xff]  ;;  %v122_v4 = vld [vmem:[#allocation8 + $0x8] sm:$0xff]  ;;  %s413_s29 = sshll.u32 %s730_s28, 4  ;;  %s731_s13 = smov [#allocation14]   ;;  %s414_s29 = int_to_ptr.vmem [resolvable:$true] %s413_s29 }
  0x4b   :  { %487 = vmatpush3.msra.mxu0 %v124_v0  ;;  %497 = vmatprep.subr.mxu1 %v221_v2  ;;  %v220_v5 = vld [vmem:[#allocation10 + $0x10] sm:$0xff]  ;;  %v121_v6 = vld [vmem:[#allocation8] sm:$0xff]  ;;  %v219_v7 = vld [vmem:[#allocation10 + $0x8] sm:$0xff]  ;;  %s425_s1 = sshll.u32 %s731_s13, 4  ;;  %s650_s15 = scalar_lea.vmem %s414_s29, 256  ;;  %s426_s1 = int_to_ptr.vmem [resolvable:$true] %s425_s1 }
  0x4c   :  { %488 = vmatprep.subr.mxu0 %v123_v1  ;;  %498 = vmatpush3.msra.mxu1 %v221_v2  ;;  %v120_v8 = vld [vmem:[#allocation2 + $0x8] sm:$0xff]  ;;  %v218_v10 = vld [vmem:[#allocation10] sm:$0xff]  ;;  %v316_v11 = vld [vmem:[#allocation11 + $0x10] sm:$0xff]  ;;  %p651_p2 = scmp.ne.s32.totalorder %s414_s29, %s650_s15  ;;  %p655_p3 = scmp.lt.s32.totalorder %s414_s29, %s414_s29 }
  0x4d   :  { %489 = vmatpush3.msra.mxu0 %v123_v1  ;;  %494 = vmatprep.mubr.msk.f32.mxu0 %vm132_vm0, %v119_v3  ;;  %v317_v9 = vld [vmem:[#allocation11 + $0x18] sm:$0xff]  ;;  %v216_v12 = vld [vmem:[#allocation5] sm:$0xff]  ;;  %v315_v13 = vld [vmem:[#allocation11 + $0x8] sm:$0xff]  ;;  %p656_p4 = scmp.lt.s32.totalorder %s650_s15, %s650_s15 }
  0x4e   :  { %490 = vmatprep.subr.mxu0 %v122_v4  ;;  %499 = vmatprep.subr.mxu1 %v220_v5  ;;  %v217_v14 = vld [vmem:[#allocation5 + $0x8] sm:$0xff]  ;;  %v312_v15 = vld [vmem:[#allocation7] sm:$0xff]  ;;  %v314_v16 = vld [vmem:[#allocation11] sm:$0xff] }
  0x4f   :  { %491 = vmatpush3.msra.mxu0 %v122_v4  ;;  %500 = vmatpush3.msra.mxu1 %v220_v5  ;;  %v313_v17 = vld [vmem:[#allocation7 + $0x8] sm:$0xff]  ;;  %v459_v18 = vld [vmem:[%s874_s6] ss:$0 sm:$0xff]  ;;  %p657_p5 = por %p656_p4, %p655_p3 }
  0x50   :  { %492 = vmatprep.subr.mxu0 %v121_v6  ;;  %501 = vmatprep.subr.mxu1 %v219_v7  ;;  %v462_v22 = vld [vmem:[%s875_s7] ss:$0 sm:$0xff] }
  0x51   :  { %493 = vmatpush3.msra.mxu0 %v121_v6  ;;  %502 = vmatpush3.msra.mxu1 %v219_v7  ;;  %v465_v26 = vld [vmem:[%s876_s8] ss:$0 sm:$0xff]  ;;  %p658_p6 = pnand %p657_p5, %p651_p2 }
  0x52   :  { %495 = vmatmul.mubr.msk.f32.vlgmr.msra.gmra.mxu0 %vm132_vm0, %v120_v8  ;;  %508 = vmatprep.subr.mxu0 %v317_v9 }
  0x53   :  { %509 = vmatpush3.msra.mxu0 %v317_v9  ;;  %503 = vmatprep.subr.mxu1 %v218_v10 }
  0x54   :  { %510 = vmatprep.subr.mxu0 %v316_v11  ;;  %504 = vmatpush3.msra.mxu1 %v218_v10 }
  0x55   :  { %511 = vmatpush3.msra.mxu0 %v316_v11  ;;  %505 = vmatprep.mubr.msk.f32.mxu1 %vm132_vm0, %v216_v12 }
  0x56   :  { %512 = vmatprep.subr.mxu0 %v315_v13  ;;  %506 = vmatmul.mubr.msk.f32.vlgmr.msra.gmra.mxu1 %vm132_vm0, %v217_v14 }
  0x57   :  { %513 = vmatpush3.msra.mxu0 %v315_v13  ;;  %516 = vmatprep.mubr.msk.f32.mxu0 %vm132_vm0, %v312_v15 }
  0x58   :  { %514 = vmatprep.subr.mxu0 %v314_v16 }
  0x59   :  { %515 = vmatpush3.msra.mxu0 %v314_v16 }
  0x5a   :  { %517 = vmatmul.mubr.msk.f32.vlgmr.msra.gmra.mxu0 %vm132_vm0, %v313_v17 }
 0x112   :  { %v496_v19 = vpop.f32.mrf.mxu0 }
 0x113   :  { %v211_v20 = vadd.f32 %v496_v19, %v459_v18 }
 0x114   :  { %v205_v21 = vpop.f32.mrf.mxu0 }
 0x115   :  { %215 = vst.msk [vmem:[#allocation13 + $0x8] sm:$0xff] %vm132_vm0, %v211_v20  ;;  %v206_v23 = vadd.f32 %v459_v18, %v205_v21 }
 0x116   :  { %v507_v24 = vpop.f32.mrf.mxu1 }
 0x117   :  { %214 = vst.msk [vmem:[#allocation13] sm:$0xff] %vm132_vm0, %v206_v23  ;;  %v307_v25 = vadd.f32 %v507_v24, %v462_v22 }
 0x118   :  { %v301_v27 = vpop.f32.mrf.mxu1 }
 0x119   :  { %661 = shalt.err (!%p658_p6)
}
 0x11a   :  { %419 = dma.vmem_to_hbm [thread:$0]  %s414_s29, 256, %s877_s9, [#allocation4], %s724_s22, %s724_s22, %s725_s23   ;;  %311 = vst.msk [vmem:[#allocation14 + $0x8] sm:$0xff] %vm132_vm0, %v307_v25  ;;  %v302_v28 = vadd.f32 %v462_v22, %v301_v27  ;;  %v518_v29 = vpop.f32.mrf.mxu0 }
 0x11b   :  { %s732_s8 = smov [#allocation16]   ;;  %v403_v30 = vadd.f32 %v518_v29, %v465_v26  ;;  %s670_s17 = scalar_lea.vmem %s426_s1, 256 }
 0x11c   :  { %s437_s16 = sshll.u32 %s732_s8, 4  ;;  %310 = vst.msk [vmem:[#allocation14] sm:$0xff] %vm132_vm0, %v302_v28  ;;  %v397_v31 = vpop.f32.mrf.mxu0  ;;  %p671_p7 = scmp.ne.s32.totalorder %s426_s1, %s670_s17  ;;  %s438_s16 = int_to_ptr.vmem [resolvable:$true] %s437_s16 }
 0x11d   :  { %p675_p8 = scmp.lt.s32.totalorder %s426_s1, %s426_s1  ;;  %p676_p9 = scmp.lt.s32.totalorder %s670_s17, %s670_s17 }
 0x11f   :  { %p677_p10 = por %p676_p9, %p675_p8 }
 0x121   :  { %p678_p11 = pnand %p677_p10, %p671_p7 }
 0x123   :  { %681 = shalt.err (!%p678_p11)
}
 0x124   :  { %431 = dma.vmem_to_hbm [thread:$0]  %s426_s1, 256, %s878_s10, [#allocation15], %s724_s22, %s724_s22, %s725_s23   ;;  %407 = vst.msk [vmem:[#allocation16 + $0x8] sm:$0xff] %vm132_vm0, %v403_v30  ;;  %v398_v32 = vadd.f32 %v465_v26, %v397_v31 }
 0x125   :  { %s690_s19 = scalar_lea.vmem %s438_s16, 256  ;;  %p695_p13 = scmp.lt.s32.totalorder %s438_s16, %s438_s16 }
 0x126   :  { %406 = vst.msk [vmem:[#allocation16] sm:$0xff] %vm132_vm0, %v398_v32  ;;  %p691_p12 = scmp.ne.s32.totalorder %s438_s16, %s690_s19  ;;  %p696_p0 = scmp.lt.s32.totalorder %s690_s19, %s690_s19 }
 0x128   :  { %p697_p1 = por %p696_p0, %p695_p13 }
 0x12a   :  { %p698_p2 = pnand %p697_p1, %p691_p12 }
 0x12c   :  { %701 = shalt.err (!%p698_p2)
}
 0x12d   :  { %443 = dma.vmem_to_hbm [thread:$0]  %s438_s16, 256, %s879_s11, [#allocation15], %s724_s22, %s724_s22, %s725_s23  }
 0x12e   :  { %718 = dma.done.wait [#allocation4], 256  }
 0x12f   :  { %719 = vsyncadd [#allocation4], 4294967040 }
 0x130   :  { %720 = dma.done.wait [#allocation15], 512  }
 0x131   :  { %721 = vsyncadd [#allocation15], 4294966784 }
 0x132   :  { %453 = vsyncpa [#allocation3], 1 }
 0x133   :  { %454 = vsyncpa [#allocation6], 1 }
 0x134   :  { %455 = vsyncpa [#allocation9], 1 }
 0x135   :  { %456 = vsyncpa [#allocation12], 1 }
 0x136   :  { %457 = vsyncpa [#allocation4], 1 }
 0x137   :  { %458 = vsyncpa [#allocation15], 1 }

</bundles_post_ra>
